<compile_context>
chip_gen: v6e
topology: v6e:2x2x1
jax: 0.10.0
libtpu: 0.0.40
codegen_flags: <defaults>
</compile_context>

<pallas_src>
import functools

import jax
import jax.numpy as jnp
from jax.experimental import pallas as pl
from jax.experimental.pallas import tpu as pltpu

EPS = 1e-5  # torch.nn.InstanceNorm2d default (affine=False, track_running_stats=False)


def _instance_norm_rows(y):
    # y: (R, HW). Per-row (= per sample, per channel) normalization over H*W.
    # Centered variance (two cheap VPU passes) for numerical safety.
    mean = jnp.mean(y, axis=-1, keepdims=True)
    d = y - mean
    var = jnp.mean(d * d, axis=-1, keepdims=True)
    return d * jax.lax.rsqrt(var + EPS)


def basic_block_kernel(w1_ref, w2_ref, mask_ref, x_ref, out_ref, *, taps):
    # w1_ref / w2_ref: (9, NC, NC) per-tap block-diagonal weights (resident VMEM)
    # mask_ref:        (9, NC, HW) f32 0/1 halo masks (shared by both convs)
    # x_ref:           (NC, HW) lane-dense slab, row = sample*C + channel;
    #                  also serves as the residual identity.
    # out_ref:         (NC, HW)
    x = x_ref[...].astype(jnp.float32)

    def conv3x3(inp, w_ref):
        # Unrolled per-tap accumulation: 9 small MXU pushes, f32 accumulate.
        acc = None
        for t, (shift, needs_mask) in enumerate(taps):
            v = pltpu.roll(inp, shift, axis=1) if shift else inp   # XLU rotate
            if needs_mask:
                v = v * mask_ref[t]                                # zero the halo
            contrib = jnp.dot(w_ref[t], v, preferred_element_type=jnp.float32)
            acc = contrib if acc is None else acc + contrib
        return acc

    # conv1 -> InstanceNorm -> ReLU (stays in registers between the two convs)
    y = jnp.maximum(_instance_norm_rows(conv3x3(x, w1_ref)), 0.0)
    # conv2 -> InstanceNorm -> +identity -> ReLU
    z = _instance_norm_rows(conv3x3(y, w2_ref)) + x
    out_ref[...] = jnp.maximum(z, 0.0).astype(out_ref.dtype)


def _block_diag_taps(w, n):
    # w: (Cout, Cin, 3, 3) -> (9, n*Cout, n*Cin), tap-major t = (dh+1)*3 + (dw+1),
    # identical (Cout, Cin) blocks on the diagonal so one matmul covers all samples.
    cout, cin = w.shape[0], w.shape[1]
    taps = jnp.transpose(w, (2, 3, 0, 1)).reshape(9, cout, cin).astype(jnp.float32)
    eye = jnp.eye(n, dtype=jnp.float32)
    bd = jnp.einsum("tij,ab->taibj", taps, eye)  # rows: a*Cout+i, cols: b*Cin+j
    return bd.reshape(9, n * cout, n * cin)


def _halo_masks(n_rows, H, W):
    # (9, n_rows, HW) f32 validity masks for the 3x3 stencil with pad=1.
    HW = H * W
    pos = jnp.arange(HW, dtype=jnp.int32)
    row = pos // W
    col = pos % W
    masks = []
    for dh in (-1, 0, 1):
        for dw in (-1, 0, 1):
            valid = ((row + dh >= 0) & (row + dh < H) &
                     (col + dw >= 0) & (col + dw < W))
            masks.append(jnp.broadcast_to(valid.astype(jnp.float32)[None, :],
                                          (n_rows, HW)))
    return jnp.stack(masks, axis=0)


def basic_block_forward(x, w1, w2):
    """x: (N, Cin, H, W) f32; w1: (Cout, Cin, 3, 3); w2: (Cout, Cout, 3, 3)."""
    N, Cin, H, W = x.shape
    Cout = w1.shape[0]
    assert Cin == Cout, "downsample is None -> residual add requires Cin == Cout"
    HW = H * W
    NC = N * Cin

    # Lane-dense whole-batch slab (contiguous reshape, no data movement).
    x_slab = x.reshape(NC, HW).astype(jnp.float32)

    w1_bd = _block_diag_taps(w1, N)          # (9, NC, NC)
    w2_bd = _block_diag_taps(w2, N)          # (9, NC, NC)
    masks = _halo_masks(NC, H, W)            # (9, NC, HW)

    # Static per-tap lane-roll amounts; center tap needs no halo mask.
    taps = tuple(((-(dh * W + dw)) % HW, not (dh == 0 and dw == 0))
                 for dh in (-1, 0, 1) for dw in (-1, 0, 1))

    kernel = functools.partial(basic_block_kernel, taps=taps)

    # NOTE: at real ResNet scale (C>=64, large HW / N), tile batch & HW along grid
    # axes, use bf16 MXU operands, and set vmem_limit_bytes (v7x VMEM is 64 MiB).
    out_slab = pl.pallas_call(
        kernel,
        out_shape=jax.ShapeDtypeStruct((NC, HW), x.dtype),
        grid_spec=pltpu.PrefetchScalarGridSpec(
            num_scalar_prefetch=0,
            grid=(1,),  # whole batch fused into a single step
            in_specs=[
                pl.BlockSpec((9, NC, NC), lambda i: (0, 0, 0)),
                pl.BlockSpec((9, NC, NC), lambda i: (0, 0, 0)),
                pl.BlockSpec((9, NC, HW), lambda i: (0, 0, 0)),
                pl.BlockSpec((NC, HW), lambda i: (0, 0)),
            ],
            out_specs=pl.BlockSpec((NC, HW), lambda i: (0, 0)),
        ),
        compiler_params=pltpu.CompilerParams(
            dimension_semantics=("arbitrary",)),
    )(w1_bd, w2_bd, masks, x_slab)

    return out_slab.reshape(N, Cout, H, W)


# ---------- parameter setup (plain-JAX glue) ----------
def weight_norm_weight(v, g):
    # nn.utils.weight_norm default dim=0: w = g * v / ||v|| (norm over dims 1,2,3)
    norm = jnp.sqrt(jnp.sum(v * v, axis=(1, 2, 3), keepdims=True))
    return g * v / norm


# ---------- pure-JAX reference for correctness check ----------
def ref_basic_block(x, w1, w2):
    def conv(inp, w):
        return jax.lax.conv_general_dilated(
            inp, w, window_strides=(1, 1), padding=((1, 1), (1, 1)),
            dimension_numbers=("NCHW", "OIHW", "NCHW"),
            precision=jax.lax.Precision.HIGHEST)

    def inorm(y):
        mean = jnp.mean(y, axis=(2, 3), keepdims=True)
        var = jnp.mean((y - mean) ** 2, axis=(2, 3), keepdims=True)
        return (y - mean) * jax.lax.rsqrt(var + EPS)

    out = jax.nn.relu(inorm(conv(x, w1)))
    out = inorm(conv(out, w2))
    out = out + x  # downsample is None
    return jax.nn.relu(out)


if __name__ == "__main__":
    # BasicBlock(inplanes=4, planes=4, stride=1, downsample=None)
    N, C, H, W = 2, 4, 16, 16
    key = jax.random.PRNGKey(0)
    kx, kv1, kg1, kv2, kg2 = jax.random.split(key, 5)

    x = jax.random.normal(kx, (N, C, H, W), dtype=jnp.float32)

    # weight_norm parameters: direction v and magnitude g (per output channel)
    v1 = jax.random.normal(kv1, (C, C, 3, 3), dtype=jnp.float32) * 0.2
    g1 = jax.random.uniform(kg1, (C, 1, 1, 1), minval=0.5, maxval=1.5,
                            dtype=jnp.float32)
    v2 = jax.random.normal(kv2, (C, C, 3, 3), dtype=jnp.float32) * 0.2
    g2 = jax.random.uniform(kg2, (C, 1, 1, 1), minval=0.5, maxval=1.5,
                            dtype=jnp.float32)

    w1 = weight_norm_weight(v1, g1)
    w2 = weight_norm_weight(v2, g2)

    out = basic_block_forward(x, w1, w2)
    out = jax.block_until_ready(out)

    ref = jax.block_until_ready(ref_basic_block(x, w1, w2))
    assert out.shape == (N, C, H, W)
    # Tolerance allows for default-precision f32 MXU passes in the kernel vs the
    # HIGHEST-precision XLA conv reference (two convs + instance norms).
    assert jnp.allclose(out, ref, atol=2e-2, rtol=2e-2), (
        f"max abs err {jnp.max(jnp.abs(out - ref))}")

    print("KERNEL_OK")
</pallas_src>

<mosaic_0001>
module attributes {stable_mosaic.version = 11 : i64} {
  func.func @basic_block_kernel(%arg0: i32, %arg1: memref<9x8x8xf32, #tpu.memory_space<vmem>>, %arg2: memref<9x8x8xf32, #tpu.memory_space<vmem>>, %arg3: memref<9x8x256xf32, #tpu.memory_space<vmem>>, %arg4: memref<8x256xf32, #tpu.memory_space<vmem>>, %arg5: memref<8x256xf32, #tpu.memory_space<vmem>>) attributes {dimension_semantics = [#tpu.dimension_semantics<arbitrary>], iteration_bounds = array<i64: 1>, scalar_prefetch = 0 : i64, scratch_operands = 0 : i64, tpu.core_type = #tpu.core_type<tc>, window_params = [{pipeline_mode = #tpu.pipeline_mode<synchronous>, transform_indices = @transform_0, window_bounds = array<i64: 9, 8, 8>}, {pipeline_mode = #tpu.pipeline_mode<synchronous>, transform_indices = @transform_1, window_bounds = array<i64: 9, 8, 8>}, {pipeline_mode = #tpu.pipeline_mode<synchronous>, transform_indices = @transform_2, window_bounds = array<i64: 9, 8, 256>}, {pipeline_mode = #tpu.pipeline_mode<synchronous>, transform_indices = @transform_3, window_bounds = array<i64: 8, 256>}, {pipeline_mode = #tpu.pipeline_mode<synchronous>, transform_indices = @transform_4, window_bounds = array<i64: 8, 256>}]} {
    %c0 = arith.constant 0 : index
    %c0_0 = arith.constant 0 : index
    %0 = vector.load %arg4[%c0, %c0_0] : memref<8x256xf32, #tpu.memory_space<vmem>>, vector<8x256xf32>
    %c17_i32 = arith.constant 17 : i32
    %1 = tpu.dynamic_rotate %0 by %c17_i32 dim 1 : vector<8x256xf32>, i32 -> vector<8x256xf32>
    %c0_1 = arith.constant 0 : index
    %c0_2 = arith.constant 0 : index
    %c0_3 = arith.constant 0 : index
    %2 = vector.load %arg3[%c0_1, %c0_2, %c0_3] : memref<9x8x256xf32, #tpu.memory_space<vmem>>, vector<1x8x256xf32>
    %3 = vector.shape_cast %2 : vector<1x8x256xf32> to vector<8x256xf32>
    %4 = arith.mulf %1, %3 : vector<8x256xf32>
    %c0_4 = arith.constant 0 : index
    %c0_5 = arith.constant 0 : index
    %c0_6 = arith.constant 0 : index
    %5 = vector.load %arg1[%c0_4, %c0_5, %c0_6] : memref<9x8x8xf32, #tpu.memory_space<vmem>>, vector<1x8x8xf32>
    %6 = vector.shape_cast %5 : vector<1x8x8xf32> to vector<8x8xf32>
    %cst = arith.constant dense<0.000000e+00> : vector<8x256xf32>
    %7 = tpu.matmul %6, %4, %cst {dimension_numbers = #tpu.dot_dimension_numbers<[1], [0], [0], [1], [0, 0, 1, 1], [], []>} : vector<8x8xf32>, vector<8x256xf32>, vector<8x256xf32> -> vector<8x256xf32>
    %c16_i32 = arith.constant 16 : i32
    %8 = tpu.dynamic_rotate %0 by %c16_i32 dim 1 : vector<8x256xf32>, i32 -> vector<8x256xf32>
    %c1 = arith.constant 1 : index
    %c0_7 = arith.constant 0 : index
    %c0_8 = arith.constant 0 : index
    %9 = vector.load %arg3[%c1, %c0_7, %c0_8] : memref<9x8x256xf32, #tpu.memory_space<vmem>>, vector<1x8x256xf32>
    %10 = vector.shape_cast %9 : vector<1x8x256xf32> to vector<8x256xf32>
    %11 = arith.mulf %8, %10 : vector<8x256xf32>
    %c1_9 = arith.constant 1 : index
    %c0_10 = arith.constant 0 : index
    %c0_11 = arith.constant 0 : index
    %12 = vector.load %arg1[%c1_9, %c0_10, %c0_11] : memref<9x8x8xf32, #tpu.memory_space<vmem>>, vector<1x8x8xf32>
    %13 = vector.shape_cast %12 : vector<1x8x8xf32> to vector<8x8xf32>
    %cst_12 = arith.constant dense<0.000000e+00> : vector<8x256xf32>
    %14 = tpu.matmul %13, %11, %cst_12 {dimension_numbers = #tpu.dot_dimension_numbers<[1], [0], [0], [1], [0, 0, 1, 1], [], []>} : vector<8x8xf32>, vector<8x256xf32>, vector<8x256xf32> -> vector<8x256xf32>
    %15 = arith.addf %7, %14 : vector<8x256xf32>
    %c15_i32 = arith.constant 15 : i32
    %16 = tpu.dynamic_rotate %0 by %c15_i32 dim 1 : vector<8x256xf32>, i32 -> vector<8x256xf32>
    %c2 = arith.constant 2 : index
    %c0_13 = arith.constant 0 : index
    %c0_14 = arith.constant 0 : index
    %17 = vector.load %arg3[%c2, %c0_13, %c0_14] : memref<9x8x256xf32, #tpu.memory_space<vmem>>, vector<1x8x256xf32>
    %18 = vector.shape_cast %17 : vector<1x8x256xf32> to vector<8x256xf32>
    %19 = arith.mulf %16, %18 : vector<8x256xf32>
    %c2_15 = arith.constant 2 : index
    %c0_16 = arith.constant 0 : index
    %c0_17 = arith.constant 0 : index
    %20 = vector.load %arg1[%c2_15, %c0_16, %c0_17] : memref<9x8x8xf32, #tpu.memory_space<vmem>>, vector<1x8x8xf32>
    %21 = vector.shape_cast %20 : vector<1x8x8xf32> to vector<8x8xf32>
    %cst_18 = arith.constant dense<0.000000e+00> : vector<8x256xf32>
    %22 = tpu.matmul %21, %19, %cst_18 {dimension_numbers = #tpu.dot_dimension_numbers<[1], [0], [0], [1], [0, 0, 1, 1], [], []>} : vector<8x8xf32>, vector<8x256xf32>, vector<8x256xf32> -> vector<8x256xf32>
    %23 = arith.addf %15, %22 : vector<8x256xf32>
    %c1_i32 = arith.constant 1 : i32
    %24 = tpu.dynamic_rotate %0 by %c1_i32 dim 1 : vector<8x256xf32>, i32 -> vector<8x256xf32>
    %c3 = arith.constant 3 : index
    %c0_19 = arith.constant 0 : index
    %c0_20 = arith.constant 0 : index
    %25 = vector.load %arg3[%c3, %c0_19, %c0_20] : memref<9x8x256xf32, #tpu.memory_space<vmem>>, vector<1x8x256xf32>
    %26 = vector.shape_cast %25 : vector<1x8x256xf32> to vector<8x256xf32>
    %27 = arith.mulf %24, %26 : vector<8x256xf32>
    %c3_21 = arith.constant 3 : index
    %c0_22 = arith.constant 0 : index
    %c0_23 = arith.constant 0 : index
    %28 = vector.load %arg1[%c3_21, %c0_22, %c0_23] : memref<9x8x8xf32, #tpu.memory_space<vmem>>, vector<1x8x8xf32>
    %29 = vector.shape_cast %28 : vector<1x8x8xf32> to vector<8x8xf32>
    %cst_24 = arith.constant dense<0.000000e+00> : vector<8x256xf32>
    %30 = tpu.matmul %29, %27, %cst_24 {dimension_numbers = #tpu.dot_dimension_numbers<[1], [0], [0], [1], [0, 0, 1, 1], [], []>} : vector<8x8xf32>, vector<8x256xf32>, vector<8x256xf32> -> vector<8x256xf32>
    %31 = arith.addf %23, %30 : vector<8x256xf32>
    %c4 = arith.constant 4 : index
    %c0_25 = arith.constant 0 : index
    %c0_26 = arith.constant 0 : index
    %32 = vector.load %arg1[%c4, %c0_25, %c0_26] : memref<9x8x8xf32, #tpu.memory_space<vmem>>, vector<1x8x8xf32>
    %33 = vector.shape_cast %32 : vector<1x8x8xf32> to vector<8x8xf32>
    %cst_27 = arith.constant dense<0.000000e+00> : vector<8x256xf32>
    %34 = tpu.matmul %33, %0, %cst_27 {dimension_numbers = #tpu.dot_dimension_numbers<[1], [0], [0], [1], [0, 0, 1, 1], [], []>} : vector<8x8xf32>, vector<8x256xf32>, vector<8x256xf32> -> vector<8x256xf32>
    %35 = arith.addf %31, %34 : vector<8x256xf32>
    %c255_i32 = arith.constant 255 : i32
    %36 = tpu.dynamic_rotate %0 by %c255_i32 dim 1 : vector<8x256xf32>, i32 -> vector<8x256xf32>
    %c5 = arith.constant 5 : index
    %c0_28 = arith.constant 0 : index
    %c0_29 = arith.constant 0 : index
    %37 = vector.load %arg3[%c5, %c0_28, %c0_29] : memref<9x8x256xf32, #tpu.memory_space<vmem>>, vector<1x8x256xf32>
    %38 = vector.shape_cast %37 : vector<1x8x256xf32> to vector<8x256xf32>
    %39 = arith.mulf %36, %38 : vector<8x256xf32>
    %c5_30 = arith.constant 5 : index
    %c0_31 = arith.constant 0 : index
    %c0_32 = arith.constant 0 : index
    %40 = vector.load %arg1[%c5_30, %c0_31, %c0_32] : memref<9x8x8xf32, #tpu.memory_space<vmem>>, vector<1x8x8xf32>
    %41 = vector.shape_cast %40 : vector<1x8x8xf32> to vector<8x8xf32>
    %cst_33 = arith.constant dense<0.000000e+00> : vector<8x256xf32>
    %42 = tpu.matmul %41, %39, %cst_33 {dimension_numbers = #tpu.dot_dimension_numbers<[1], [0], [0], [1], [0, 0, 1, 1], [], []>} : vector<8x8xf32>, vector<8x256xf32>, vector<8x256xf32> -> vector<8x256xf32>
    %43 = arith.addf %35, %42 : vector<8x256xf32>
    %c241_i32 = arith.constant 241 : i32
    %44 = tpu.dynamic_rotate %0 by %c241_i32 dim 1 : vector<8x256xf32>, i32 -> vector<8x256xf32>
    %c6 = arith.constant 6 : index
    %c0_34 = arith.constant 0 : index
    %c0_35 = arith.constant 0 : index
    %45 = vector.load %arg3[%c6, %c0_34, %c0_35] : memref<9x8x256xf32, #tpu.memory_space<vmem>>, vector<1x8x256xf32>
    %46 = vector.shape_cast %45 : vector<1x8x256xf32> to vector<8x256xf32>
    %47 = arith.mulf %44, %46 : vector<8x256xf32>
    %c6_36 = arith.constant 6 : index
    %c0_37 = arith.constant 0 : index
    %c0_38 = arith.constant 0 : index
    %48 = vector.load %arg1[%c6_36, %c0_37, %c0_38] : memref<9x8x8xf32, #tpu.memory_space<vmem>>, vector<1x8x8xf32>
    %49 = vector.shape_cast %48 : vector<1x8x8xf32> to vector<8x8xf32>
    %cst_39 = arith.constant dense<0.000000e+00> : vector<8x256xf32>
    %50 = tpu.matmul %49, %47, %cst_39 {dimension_numbers = #tpu.dot_dimension_numbers<[1], [0], [0], [1], [0, 0, 1, 1], [], []>} : vector<8x8xf32>, vector<8x256xf32>, vector<8x256xf32> -> vector<8x256xf32>
    %51 = arith.addf %43, %50 : vector<8x256xf32>
    %c240_i32 = arith.constant 240 : i32
    %52 = tpu.dynamic_rotate %0 by %c240_i32 dim 1 : vector<8x256xf32>, i32 -> vector<8x256xf32>
    %c7 = arith.constant 7 : index
    %c0_40 = arith.constant 0 : index
    %c0_41 = arith.constant 0 : index
    %53 = vector.load %arg3[%c7, %c0_40, %c0_41] : memref<9x8x256xf32, #tpu.memory_space<vmem>>, vector<1x8x256xf32>
    %54 = vector.shape_cast %53 : vector<1x8x256xf32> to vector<8x256xf32>
    %55 = arith.mulf %52, %54 : vector<8x256xf32>
    %c7_42 = arith.constant 7 : index
    %c0_43 = arith.constant 0 : index
    %c0_44 = arith.constant 0 : index
    %56 = vector.load %arg1[%c7_42, %c0_43, %c0_44] : memref<9x8x8xf32, #tpu.memory_space<vmem>>, vector<1x8x8xf32>
    %57 = vector.shape_cast %56 : vector<1x8x8xf32> to vector<8x8xf32>
    %cst_45 = arith.constant dense<0.000000e+00> : vector<8x256xf32>
    %58 = tpu.matmul %57, %55, %cst_45 {dimension_numbers = #tpu.dot_dimension_numbers<[1], [0], [0], [1], [0, 0, 1, 1], [], []>} : vector<8x8xf32>, vector<8x256xf32>, vector<8x256xf32> -> vector<8x256xf32>
    %59 = arith.addf %51, %58 : vector<8x256xf32>
    %c239_i32 = arith.constant 239 : i32
    %60 = tpu.dynamic_rotate %0 by %c239_i32 dim 1 : vector<8x256xf32>, i32 -> vector<8x256xf32>
    %c8 = arith.constant 8 : index
    %c0_46 = arith.constant 0 : index
    %c0_47 = arith.constant 0 : index
    %61 = vector.load %arg3[%c8, %c0_46, %c0_47] : memref<9x8x256xf32, #tpu.memory_space<vmem>>, vector<1x8x256xf32>
    %62 = vector.shape_cast %61 : vector<1x8x256xf32> to vector<8x256xf32>
    %63 = arith.mulf %60, %62 : vector<8x256xf32>
    %c8_48 = arith.constant 8 : index
    %c0_49 = arith.constant 0 : index
    %c0_50 = arith.constant 0 : index
    %64 = vector.load %arg1[%c8_48, %c0_49, %c0_50] : memref<9x8x8xf32, #tpu.memory_space<vmem>>, vector<1x8x8xf32>
    %65 = vector.shape_cast %64 : vector<1x8x8xf32> to vector<8x8xf32>
    %cst_51 = arith.constant dense<0.000000e+00> : vector<8x256xf32>
    %66 = tpu.matmul %65, %63, %cst_51 {dimension_numbers = #tpu.dot_dimension_numbers<[1], [0], [0], [1], [0, 0, 1, 1], [], []>} : vector<8x8xf32>, vector<8x256xf32>, vector<8x256xf32> -> vector<8x256xf32>
    %67 = arith.addf %59, %66 : vector<8x256xf32>
    %cst_52 = arith.constant dense<0.000000e+00> : vector<8xf32>
    %68 = vector.multi_reduction <add>, %67, %cst_52 [1] : vector<8x256xf32> to vector<8xf32>
    %69 = vector.shape_cast %68 : vector<8xf32> to vector<8x1xf32>
    %cst_53 = arith.constant 2.560000e+02 : f32
    %70 = vector.broadcast %cst_53 : f32 to vector<8x1xf32>
    %71 = arith.divf %69, %70 : vector<8x1xf32>
    %72 = vector.broadcast %71 : vector<8x1xf32> to vector<8x256xf32>
    %73 = arith.subf %67, %72 : vector<8x256xf32>
    %74 = arith.mulf %73, %73 : vector<8x256xf32>
    %cst_54 = arith.constant dense<0.000000e+00> : vector<8xf32>
    %75 = vector.multi_reduction <add>, %74, %cst_54 [1] : vector<8x256xf32> to vector<8xf32>
    %76 = vector.shape_cast %75 : vector<8xf32> to vector<8x1xf32>
    %cst_55 = arith.constant 2.560000e+02 : f32
    %77 = vector.broadcast %cst_55 : f32 to vector<8x1xf32>
    %78 = arith.divf %76, %77 : vector<8x1xf32>
    %cst_56 = arith.constant 9.99999974E-6 : f32
    %79 = vector.broadcast %cst_56 : f32 to vector<8x1xf32>
    %80 = arith.addf %78, %79 : vector<8x1xf32>
    %81 = math.rsqrt %80 : vector<8x1xf32>
    %82 = vector.broadcast %81 : vector<8x1xf32> to vector<8x256xf32>
    %83 = arith.mulf %73, %82 : vector<8x256xf32>
    %cst_57 = arith.constant 0.000000e+00 : f32
    %84 = vector.broadcast %cst_57 : f32 to vector<8x256xf32>
    %85 = arith.maximumf %83, %84 : vector<8x256xf32>
    %c17_i32_58 = arith.constant 17 : i32
    %86 = tpu.dynamic_rotate %85 by %c17_i32_58 dim 1 : vector<8x256xf32>, i32 -> vector<8x256xf32>
    %c0_59 = arith.constant 0 : index
    %c0_60 = arith.constant 0 : index
    %c0_61 = arith.constant 0 : index
    %87 = vector.load %arg3[%c0_59, %c0_60, %c0_61] : memref<9x8x256xf32, #tpu.memory_space<vmem>>, vector<1x8x256xf32>
    %88 = vector.shape_cast %87 : vector<1x8x256xf32> to vector<8x256xf32>
    %89 = arith.mulf %86, %88 : vector<8x256xf32>
    %c0_62 = arith.constant 0 : index
    %c0_63 = arith.constant 0 : index
    %c0_64 = arith.constant 0 : index
    %90 = vector.load %arg2[%c0_62, %c0_63, %c0_64] : memref<9x8x8xf32, #tpu.memory_space<vmem>>, vector<1x8x8xf32>
    %91 = vector.shape_cast %90 : vector<1x8x8xf32> to vector<8x8xf32>
    %cst_65 = arith.constant dense<0.000000e+00> : vector<8x256xf32>
    %92 = tpu.matmul %91, %89, %cst_65 {dimension_numbers = #tpu.dot_dimension_numbers<[1], [0], [0], [1], [0, 0, 1, 1], [], []>} : vector<8x8xf32>, vector<8x256xf32>, vector<8x256xf32> -> vector<8x256xf32>
    %c16_i32_66 = arith.constant 16 : i32
    %93 = tpu.dynamic_rotate %85 by %c16_i32_66 dim 1 : vector<8x256xf32>, i32 -> vector<8x256xf32>
    %c1_67 = arith.constant 1 : index
    %c0_68 = arith.constant 0 : index
    %c0_69 = arith.constant 0 : index
    %94 = vector.load %arg3[%c1_67, %c0_68, %c0_69] : memref<9x8x256xf32, #tpu.memory_space<vmem>>, vector<1x8x256xf32>
    %95 = vector.shape_cast %94 : vector<1x8x256xf32> to vector<8x256xf32>
    %96 = arith.mulf %93, %95 : vector<8x256xf32>
    %c1_70 = arith.constant 1 : index
    %c0_71 = arith.constant 0 : index
    %c0_72 = arith.constant 0 : index
    %97 = vector.load %arg2[%c1_70, %c0_71, %c0_72] : memref<9x8x8xf32, #tpu.memory_space<vmem>>, vector<1x8x8xf32>
    %98 = vector.shape_cast %97 : vector<1x8x8xf32> to vector<8x8xf32>
    %cst_73 = arith.constant dense<0.000000e+00> : vector<8x256xf32>
    %99 = tpu.matmul %98, %96, %cst_73 {dimension_numbers = #tpu.dot_dimension_numbers<[1], [0], [0], [1], [0, 0, 1, 1], [], []>} : vector<8x8xf32>, vector<8x256xf32>, vector<8x256xf32> -> vector<8x256xf32>
    %100 = arith.addf %92, %99 : vector<8x256xf32>
    %c15_i32_74 = arith.constant 15 : i32
    %101 = tpu.dynamic_rotate %85 by %c15_i32_74 dim 1 : vector<8x256xf32>, i32 -> vector<8x256xf32>
    %c2_75 = arith.constant 2 : index
    %c0_76 = arith.constant 0 : index
    %c0_77 = arith.constant 0 : index
    %102 = vector.load %arg3[%c2_75, %c0_76, %c0_77] : memref<9x8x256xf32, #tpu.memory_space<vmem>>, vector<1x8x256xf32>
    %103 = vector.shape_cast %102 : vector<1x8x256xf32> to vector<8x256xf32>
    %104 = arith.mulf %101, %103 : vector<8x256xf32>
    %c2_78 = arith.constant 2 : index
    %c0_79 = arith.constant 0 : index
    %c0_80 = arith.constant 0 : index
    %105 = vector.load %arg2[%c2_78, %c0_79, %c0_80] : memref<9x8x8xf32, #tpu.memory_space<vmem>>, vector<1x8x8xf32>
    %106 = vector.shape_cast %105 : vector<1x8x8xf32> to vector<8x8xf32>
    %cst_81 = arith.constant dense<0.000000e+00> : vector<8x256xf32>
    %107 = tpu.matmul %106, %104, %cst_81 {dimension_numbers = #tpu.dot_dimension_numbers<[1], [0], [0], [1], [0, 0, 1, 1], [], []>} : vector<8x8xf32>, vector<8x256xf32>, vector<8x256xf32> -> vector<8x256xf32>
    %108 = arith.addf %100, %107 : vector<8x256xf32>
    %c1_i32_82 = arith.constant 1 : i32
    %109 = tpu.dynamic_rotate %85 by %c1_i32_82 dim 1 : vector<8x256xf32>, i32 -> vector<8x256xf32>
    %c3_83 = arith.constant 3 : index
    %c0_84 = arith.constant 0 : index
    %c0_85 = arith.constant 0 : index
    %110 = vector.load %arg3[%c3_83, %c0_84, %c0_85] : memref<9x8x256xf32, #tpu.memory_space<vmem>>, vector<1x8x256xf32>
    %111 = vector.shape_cast %110 : vector<1x8x256xf32> to vector<8x256xf32>
    %112 = arith.mulf %109, %111 : vector<8x256xf32>
    %c3_86 = arith.constant 3 : index
    %c0_87 = arith.constant 0 : index
    %c0_88 = arith.constant 0 : index
    %113 = vector.load %arg2[%c3_86, %c0_87, %c0_88] : memref<9x8x8xf32, #tpu.memory_space<vmem>>, vector<1x8x8xf32>
    %114 = vector.shape_cast %113 : vector<1x8x8xf32> to vector<8x8xf32>
    %cst_89 = arith.constant dense<0.000000e+00> : vector<8x256xf32>
    %115 = tpu.matmul %114, %112, %cst_89 {dimension_numbers = #tpu.dot_dimension_numbers<[1], [0], [0], [1], [0, 0, 1, 1], [], []>} : vector<8x8xf32>, vector<8x256xf32>, vector<8x256xf32> -> vector<8x256xf32>
    %116 = arith.addf %108, %115 : vector<8x256xf32>
    %c4_90 = arith.constant 4 : index
    %c0_91 = arith.constant 0 : index
    %c0_92 = arith.constant 0 : index
    %117 = vector.load %arg2[%c4_90, %c0_91, %c0_92] : memref<9x8x8xf32, #tpu.memory_space<vmem>>, vector<1x8x8xf32>
    %118 = vector.shape_cast %117 : vector<1x8x8xf32> to vector<8x8xf32>
    %cst_93 = arith.constant dense<0.000000e+00> : vector<8x256xf32>
    %119 = tpu.matmul %118, %85, %cst_93 {dimension_numbers = #tpu.dot_dimension_numbers<[1], [0], [0], [1], [0, 0, 1, 1], [], []>} : vector<8x8xf32>, vector<8x256xf32>, vector<8x256xf32> -> vector<8x256xf32>
    %120 = arith.addf %116, %119 : vector<8x256xf32>
    %c255_i32_94 = arith.constant 255 : i32
    %121 = tpu.dynamic_rotate %85 by %c255_i32_94 dim 1 : vector<8x256xf32>, i32 -> vector<8x256xf32>
    %c5_95 = arith.constant 5 : index
    %c0_96 = arith.constant 0 : index
    %c0_97 = arith.constant 0 : index
    %122 = vector.load %arg3[%c5_95, %c0_96, %c0_97] : memref<9x8x256xf32, #tpu.memory_space<vmem>>, vector<1x8x256xf32>
    %123 = vector.shape_cast %122 : vector<1x8x256xf32> to vector<8x256xf32>
    %124 = arith.mulf %121, %123 : vector<8x256xf32>
    %c5_98 = arith.constant 5 : index
    %c0_99 = arith.constant 0 : index
    %c0_100 = arith.constant 0 : index
    %125 = vector.load %arg2[%c5_98, %c0_99, %c0_100] : memref<9x8x8xf32, #tpu.memory_space<vmem>>, vector<1x8x8xf32>
    %126 = vector.shape_cast %125 : vector<1x8x8xf32> to vector<8x8xf32>
    %cst_101 = arith.constant dense<0.000000e+00> : vector<8x256xf32>
    %127 = tpu.matmul %126, %124, %cst_101 {dimension_numbers = #tpu.dot_dimension_numbers<[1], [0], [0], [1], [0, 0, 1, 1], [], []>} : vector<8x8xf32>, vector<8x256xf32>, vector<8x256xf32> -> vector<8x256xf32>
    %128 = arith.addf %120, %127 : vector<8x256xf32>
    %c241_i32_102 = arith.constant 241 : i32
    %129 = tpu.dynamic_rotate %85 by %c241_i32_102 dim 1 : vector<8x256xf32>, i32 -> vector<8x256xf32>
    %c6_103 = arith.constant 6 : index
    %c0_104 = arith.constant 0 : index
    %c0_105 = arith.constant 0 : index
    %130 = vector.load %arg3[%c6_103, %c0_104, %c0_105] : memref<9x8x256xf32, #tpu.memory_space<vmem>>, vector<1x8x256xf32>
    %131 = vector.shape_cast %130 : vector<1x8x256xf32> to vector<8x256xf32>
    %132 = arith.mulf %129, %131 : vector<8x256xf32>
    %c6_106 = arith.constant 6 : index
    %c0_107 = arith.constant 0 : index
    %c0_108 = arith.constant 0 : index
    %133 = vector.load %arg2[%c6_106, %c0_107, %c0_108] : memref<9x8x8xf32, #tpu.memory_space<vmem>>, vector<1x8x8xf32>
    %134 = vector.shape_cast %133 : vector<1x8x8xf32> to vector<8x8xf32>
    %cst_109 = arith.constant dense<0.000000e+00> : vector<8x256xf32>
    %135 = tpu.matmul %134, %132, %cst_109 {dimension_numbers = #tpu.dot_dimension_numbers<[1], [0], [0], [1], [0, 0, 1, 1], [], []>} : vector<8x8xf32>, vector<8x256xf32>, vector<8x256xf32> -> vector<8x256xf32>
    %136 = arith.addf %128, %135 : vector<8x256xf32>
    %c240_i32_110 = arith.constant 240 : i32
    %137 = tpu.dynamic_rotate %85 by %c240_i32_110 dim 1 : vector<8x256xf32>, i32 -> vector<8x256xf32>
    %c7_111 = arith.constant 7 : index
    %c0_112 = arith.constant 0 : index
    %c0_113 = arith.constant 0 : index
    %138 = vector.load %arg3[%c7_111, %c0_112, %c0_113] : memref<9x8x256xf32, #tpu.memory_space<vmem>>, vector<1x8x256xf32>
    %139 = vector.shape_cast %138 : vector<1x8x256xf32> to vector<8x256xf32>
    %140 = arith.mulf %137, %139 : vector<8x256xf32>
    %c7_114 = arith.constant 7 : index
    %c0_115 = arith.constant 0 : index
    %c0_116 = arith.constant 0 : index
    %141 = vector.load %arg2[%c7_114, %c0_115, %c0_116] : memref<9x8x8xf32, #tpu.memory_space<vmem>>, vector<1x8x8xf32>
    %142 = vector.shape_cast %141 : vector<1x8x8xf32> to vector<8x8xf32>
    %cst_117 = arith.constant dense<0.000000e+00> : vector<8x256xf32>
    %143 = tpu.matmul %142, %140, %cst_117 {dimension_numbers = #tpu.dot_dimension_numbers<[1], [0], [0], [1], [0, 0, 1, 1], [], []>} : vector<8x8xf32>, vector<8x256xf32>, vector<8x256xf32> -> vector<8x256xf32>
    %144 = arith.addf %136, %143 : vector<8x256xf32>
    %c239_i32_118 = arith.constant 239 : i32
    %145 = tpu.dynamic_rotate %85 by %c239_i32_118 dim 1 : vector<8x256xf32>, i32 -> vector<8x256xf32>
    %c8_119 = arith.constant 8 : index
    %c0_120 = arith.constant 0 : index
    %c0_121 = arith.constant 0 : index
    %146 = vector.load %arg3[%c8_119, %c0_120, %c0_121] : memref<9x8x256xf32, #tpu.memory_space<vmem>>, vector<1x8x256xf32>
    %147 = vector.shape_cast %146 : vector<1x8x256xf32> to vector<8x256xf32>
    %148 = arith.mulf %145, %147 : vector<8x256xf32>
    %c8_122 = arith.constant 8 : index
    %c0_123 = arith.constant 0 : index
    %c0_124 = arith.constant 0 : index
    %149 = vector.load %arg2[%c8_122, %c0_123, %c0_124] : memref<9x8x8xf32, #tpu.memory_space<vmem>>, vector<1x8x8xf32>
    %150 = vector.shape_cast %149 : vector<1x8x8xf32> to vector<8x8xf32>
    %cst_125 = arith.constant dense<0.000000e+00> : vector<8x256xf32>
    %151 = tpu.matmul %150, %148, %cst_125 {dimension_numbers = #tpu.dot_dimension_numbers<[1], [0], [0], [1], [0, 0, 1, 1], [], []>} : vector<8x8xf32>, vector<8x256xf32>, vector<8x256xf32> -> vector<8x256xf32>
    %152 = arith.addf %144, %151 : vector<8x256xf32>
    %cst_126 = arith.constant dense<0.000000e+00> : vector<8xf32>
    %153 = vector.multi_reduction <add>, %152, %cst_126 [1] : vector<8x256xf32> to vector<8xf32>
    %154 = vector.shape_cast %153 : vector<8xf32> to vector<8x1xf32>
    %cst_127 = arith.constant 2.560000e+02 : f32
    %155 = vector.broadcast %cst_127 : f32 to vector<8x1xf32>
    %156 = arith.divf %154, %155 : vector<8x1xf32>
    %157 = vector.broadcast %156 : vector<8x1xf32> to vector<8x256xf32>
    %158 = arith.subf %152, %157 : vector<8x256xf32>
    %159 = arith.mulf %158, %158 : vector<8x256xf32>
    %cst_128 = arith.constant dense<0.000000e+00> : vector<8xf32>
    %160 = vector.multi_reduction <add>, %159, %cst_128 [1] : vector<8x256xf32> to vector<8xf32>
    %161 = vector.shape_cast %160 : vector<8xf32> to vector<8x1xf32>
    %cst_129 = arith.constant 2.560000e+02 : f32
    %162 = vector.broadcast %cst_129 : f32 to vector<8x1xf32>
    %163 = arith.divf %161, %162 : vector<8x1xf32>
    %cst_130 = arith.constant 9.99999974E-6 : f32
    %164 = vector.broadcast %cst_130 : f32 to vector<8x1xf32>
    %165 = arith.addf %163, %164 : vector<8x1xf32>
    %166 = math.rsqrt %165 : vector<8x1xf32>
    %167 = vector.broadcast %166 : vector<8x1xf32> to vector<8x256xf32>
    %168 = arith.mulf %158, %167 : vector<8x256xf32>
    %169 = arith.addf %168, %0 : vector<8x256xf32>
    %cst_131 = arith.constant 0.000000e+00 : f32
    %170 = vector.broadcast %cst_131 : f32 to vector<8x256xf32>
    %171 = arith.maximumf %169, %170 : vector<8x256xf32>
    %c0_132 = arith.constant 0 : index
    %c0_133 = arith.constant 0 : index
    %172 = vector.load %arg5[%c0_132, %c0_133] : memref<8x256xf32, #tpu.memory_space<vmem>>, vector<8x256xf32>
    tpu.vector_store %arg5[%c0_132, %c0_133], %171 {strides = array<i32>} : memref<8x256xf32, #tpu.memory_space<vmem>>, vector<8x256xf32>,
    return
  }
  func.func @transform_0(%arg0: i32) -> (i32, i32, i32) {
    %c0_i32 = arith.constant 0 : i32
    %c0_i32_0 = arith.constant 0 : i32
    %c0_i32_1 = arith.constant 0 : i32
    %c0_i32_2 = arith.constant 0 : i32
    return %c0_i32, %c0_i32_0, %c0_i32_1 : i32, i32, i32
  }
  func.func @transform_1(%arg0: i32) -> (i32, i32, i32) {
    %c0_i32 = arith.constant 0 : i32
    %c0_i32_0 = arith.constant 0 : i32
    %c0_i32_1 = arith.constant 0 : i32
    %c0_i32_2 = arith.constant 0 : i32
    return %c0_i32, %c0_i32_0, %c0_i32_1 : i32, i32, i32
  }
  func.func @transform_2(%arg0: i32) -> (i32, i32, i32) {
    %c0_i32 = arith.constant 0 : i32
    %c0_i32_0 = arith.constant 0 : i32
    %c0_i32_1 = arith.constant 0 : i32
    %c0_i32_2 = arith.constant 0 : i32
    return %c0_i32, %c0_i32_0, %c0_i32_1 : i32, i32, i32
  }
  func.func @transform_3(%arg0: i32) -> (i32, i32) {
    %c0_i32 = arith.constant 0 : i32
    %c0_i32_0 = arith.constant 0 : i32
    %c0_i32_1 = arith.constant 0 : i32
    return %c0_i32, %c0_i32_0 : i32, i32
  }
  func.func @transform_4(%arg0: i32) -> (i32, i32) {
    %c0_i32 = arith.constant 0 : i32
    %c0_i32_0 = arith.constant 0 : i32
    %c0_i32_1 = arith.constant 0 : i32
    return %c0_i32, %c0_i32_0 : i32, i32
  }
}

</mosaic_0001>

<bundles_post_ra>
// kernel: tpu_custom_call.1
= control target key start
LH: loop header
LB: loop body
LE: loop exit
PB: predicated region body
PF: predicated region fallthrough
CT: control target
= control target key end

     0   :  { %s1715_s17 = smov 17   ;;  %s1716_s18 = smov 16   ;;  %v1717_v2 = vmov 0.0   ;;  %s2091_s0 = inlined_call_operand.vmem [shape: f32[9,8,8], index: 0, kind: input, shape index: {}]   ;;  %s2092_s1 = inlined_call_operand.vmem [shape: f32[9,8,8], index: 1, kind: input, shape index: {}]   ;;  %s2093_s2 = inlined_call_operand.vmem [shape: f32[9,8,256], index: 2, kind: input, shape index: {}]   ;;  %s2094_s3 = inlined_call_operand.vmem [shape: f32[8,256], index: 3, kind: input, shape index: {}]   ;;  %s2095_s4 = inlined_call_operand.hbm [shape: f32[8,256], index: 4, kind: output, shape index: {}]  }
   0x1   :  { %v1753_v0 = vld [vmem:[%s2094_s3] sm:$0xff]  ;;  %v1762_v1 = vld [vmem:[%s2094_s3 + $0x8] sm:$0xff]  ;;  %116 = vmatprep.mubr.f32.mxu0 %v1717_v2  ;;  %190 = vmatprep.mubr.f32.mxu1 %v1717_v2 }
   0x2   :  { %20 = vrot.lane.b32.xlu1 %v1753_v0, %s1715_s17  ;;  %34 = vrot.lane.b32.xlu0 %v1753_v0, %s1716_s18 }
   0x6   :  { %22 = vrot.lane.b32.xlu1 %v1762_v1, %s1715_s17  ;;  %36 = vrot.lane.b32.xlu0 %v1762_v1, %s1716_s18 }
   0x7   :  { %9 = vsyncpa [#allocation3], 0  ;;  %s1718_s21 = smov 15   ;;  %s1719_s3 = smov 1   ;;  %v24_v3 = vlaneseq  ;;  %v1801_v7 = vld [vmem:[%s2093_s2 + $0x8] sm:$0xff]  ;;  %v1806_v8 = vld [vmem:[%s2093_s2 + $0x18] sm:$0xff] }
   0x8   :  { %s1720_s22 = smov 127   ;;  %s1721_s23 = smov 113   ;;  %v1811_v9 = vld [vmem:[%s2093_s2 + $0x10] sm:$0xff]  ;;  %v1816_v10 = vld [vmem:[%s2093_s2] sm:$0xff]  ;;  %v1839_v22 = vld [vmem:[%s2093_s2 + $0x28] sm:$0xff]  ;;  %vm48_vm3 = vcmask 64512  }
   0x9   :  { %s1722_s24 = smov 112   ;;  %s1723_s25 = smov 111   ;;  %v1794_v4 = vand.u32 127, %v24_v3  ;;  %v1832_v19 = vld [vmem:[%s2093_s2 + $0x20] sm:$0xff]  ;;  %v1633_v23 = vld [vmem:[%s2091_s0 + $0x8] sm:$0xff]  ;;  %v1859_v31 = vld [vmem:[%s2093_s2 + $0x30] sm:$0xff] }
   0xa   :  { %199 = vrot.lane.b32.xlu1 %v1762_v1, %s1718_s21  ;;  %197 = vrot.lane.b32.xlu0 %v1753_v0, %s1718_s21  ;;  %v33_v24 = vld [vmem:[%s2091_s0] sm:$0xff]  ;;  %v1864_v32 = vld [vmem:[%s2093_s2 + $0x38] sm:$0xff] }
   0xb   :  { %vm26_vm0 = vcmp.lt.s32.totalorder %v1794_v4, 17  ;;  %vm38_vm1 = vcmp.lt.s32.totalorder %v1794_v4, 16  ;;  %vm201_vm2 = vcmp.lt.s32.totalorder %v1794_v4, 15  ;;  %vm291_vm4 = vcmp.lt.s32.totalorder %v1794_v4, 1  ;;  %v1638_v33 = vld [vmem:[%s2091_s0 + $0x10] sm:$0xff]  ;;  %v1888_v41 = vld [vmem:[%s2093_s2 + $0x58] sm:$0xff] }
   0xc   :  { %vm459_vm5 = vcmp.lt.s32.totalorder %v1794_v4, 127  ;;  %v1881_v40 = vld [vmem:[%s2093_s2 + $0x50] sm:$0xff]  ;;  %v1642_v42 = vld [vmem:[%s2091_s0 + $0x18] sm:$0xff]  ;;  %v1644_v43 = vld [vmem:[%s2091_s0 + $0x20] sm:$0xff]  ;;  %vm549_vm6 = vcmp.lt.s32.totalorder %v1794_v4, 113  ;;  %vm639_vm7 = vcmp.lt.s32.totalorder %v1794_v4, 112 }
   0xd   :  { %v1910_v50 = vld [vmem:[%s2093_s2 + $0x60] sm:$0xff]  ;;  %v1915_v51 = vld [vmem:[%s2093_s2 + $0x68] sm:$0xff]  ;;  %v1933_v59 = vld [vmem:[%s2093_s2 + $0x70] sm:$0xff]  ;;  %vm729_vm8 = vcmp.lt.s32.totalorder %v1794_v4, 111 }
   0xe   :  { %289 = vrot.lane.b32.xlu1 %v1762_v1, %s1719_s3  ;;  %287 = vrot.lane.b32.xlu0 %v1753_v0, %s1719_s3  ;;  %v1648_v52 = vld [vmem:[%s2091_s0 + $0x28] sm:$0xff]  ;;  %v1938_v60 = vld [vmem:[%s2093_s2 + $0x78] sm:$0xff] }
   0xf   :  { %v1652_v61 = vld [vmem:[%s2091_s0 + $0x30] sm:$0xff] }
  0x12   :  { %457 = vrot.lane.b32.xlu1 %v1762_v1, %s1720_s22  ;;  %455 = vrot.lane.b32.xlu0 %v1753_v0, %s1720_s22 }
  0x16   :  { %547 = vrot.lane.b32.xlu1 %v1762_v1, %s1721_s23  ;;  %545 = vrot.lane.b32.xlu0 %v1753_v0, %s1721_s23 }
  0x1a   :  { %637 = vrot.lane.b32.xlu1 %v1762_v1, %s1722_s24  ;;  %635 = vrot.lane.b32.xlu0 %v1753_v0, %s1722_s24 }
  0x1e   :  { %727 = vrot.lane.b32.xlu1 %v1762_v1, %s1723_s25  ;;  %725 = vrot.lane.b32.xlu0 %v1753_v0, %s1723_s25 }
  0x74   :  { %v21_v5 = vpop.permute.xlu1 %20  ;;  %v35_v6 = vpop.permute.xlu0 %34 }
  0x78   :  { %v23_v11 = vpop.permute.xlu1 %22  ;;  %v37_v12 = vpop.permute.xlu0 %36 }
  0x79   :  { %v28_v13 = vsel %vm26_vm0, %v23_v11, %v21_v5  ;;  %v40_v14 = vsel %vm38_vm1, %v37_v12, %v35_v6  ;;  %v27_v15 = vsel %vm26_vm0, %v21_v5, %v23_v11  ;;  %v39_v16 = vsel %vm38_vm1, %v35_v6, %v37_v12  ;;  %v1955_v12 = vld [vmem:[%s2093_s2 + $0x80] sm:$0xff] }
  0x7a   :  { %v32_v17 = vmul.f32 %v1801_v7, %v27_v15  ;;  %v45_v18 = vmul.f32 %v1806_v8, %v39_v16  ;;  %v44_v20 = vmul.f32 %v1811_v9, %v40_v14  ;;  %v31_v21 = vmul.f32 %v1816_v10, %v28_v13  ;;  %v1960_v13 = vld [vmem:[%s2093_s2 + $0x88] sm:$0xff]  ;;  %v1656_v14 = vld [vmem:[%s2091_s0 + $0x38] sm:$0xff] }
  0x7c   :  { %156 = vmatprep.subr.mxu1 %v32_v17  ;;  %v200_v25 = vpop.permute.xlu1 %199  ;;  %82 = vmatprep.subr.mxu0 %v45_v18  ;;  %v198_v26 = vpop.permute.xlu0 %197 }
  0x7d   :  { %v202_v27 = vsel %vm201_vm2, %v198_v26, %v200_v25  ;;  %v203_v28 = vsel %vm201_vm2, %v200_v25, %v198_v26  ;;  %83 = vmatpush1.msra.mxu0 %v44_v20  ;;  %157 = vmatpush1.msra.mxu1 %v31_v21 }
  0x7e   :  { %v207_v29 = vmul.f32 %v1832_v19, %v203_v28  ;;  %v208_v30 = vmul.f32 %v1839_v22, %v202_v27  ;;  %1634 = vmatmul.mubr.msk.f32.vlgmr.msra.gmra.mxu0 %vm48_vm3, %v1633_v23  ;;  %1635 = vmatmul.mubr.msk.f32.vlgmr.msra.gmra.mxu1 %vm48_vm3, %v33_v24  ;;  %v1660_v23 = vld [vmem:[%s2091_s0 + $0x40] sm:$0xff] }
  0x7f   :  { %278 = vmatprep.mubr.f32.mxu0 %v1717_v2  ;;  %368 = vmatprep.mubr.f32.mxu1 %v1717_v2 }
  0x80   :  { %v290_v34 = vpop.permute.xlu1 %289  ;;  %244 = vmatprep.subr.mxu0 %v208_v30  ;;  %v288_v35 = vpop.permute.xlu0 %287 }
  0x81   :  { %v292_v36 = vsel %vm291_vm4, %v288_v35, %v290_v34  ;;  %v293_v37 = vsel %vm291_vm4, %v290_v34, %v288_v35  ;;  %245 = vmatpush1.msra.mxu0 %v207_v29 }
  0x82   :  { %v297_v38 = vmul.f32 %v1859_v31, %v293_v37  ;;  %v298_v39 = vmul.f32 %v1864_v32, %v292_v36  ;;  %1639 = vmatmul.mubr.msk.f32.vlgmr.msra.gmra.mxu0 %vm48_vm3, %v1638_v33  ;;  %412 = vmatprep.subr.mxu0 %v1762_v1 }
  0x83   :  { %413 = vmatpush1.msra.mxu0 %v1753_v0  ;;  %446 = vmatprep.mubr.f32.mxu0 %v1717_v2 }
  0x84   :  { %v458_v44 = vpop.permute.xlu1 %457  ;;  %334 = vmatprep.subr.mxu1 %v298_v39  ;;  %v456_v45 = vpop.permute.xlu0 %455 }
  0x85   :  { %v460_v46 = vsel %vm459_vm5, %v456_v45, %v458_v44  ;;  %v461_v47 = vsel %vm459_vm5, %v458_v44, %v456_v45  ;;  %335 = vmatpush1.msra.mxu1 %v297_v38 }
  0x86   :  { %v465_v48 = vmul.f32 %v1881_v40, %v460_v46  ;;  %v466_v49 = vmul.f32 %v1888_v41, %v461_v47  ;;  %1643 = vmatmul.mubr.msk.f32.vlgmr.msra.gmra.mxu1 %vm48_vm3, %v1642_v42  ;;  %1645 = vmatmul.mubr.msk.f32.vlgmr.msra.gmra.mxu0 %vm48_vm3, %v1644_v43 }
  0x87   :  { %536 = vmatprep.mubr.f32.mxu1 %v1717_v2  ;;  %626 = vmatprep.mubr.f32.mxu0 %v1717_v2 }
  0x88   :  { %v548_v53 = vpop.permute.xlu1 %547  ;;  %502 = vmatprep.subr.mxu1 %v466_v49  ;;  %v546_v54 = vpop.permute.xlu0 %545 }
  0x89   :  { %v550_v55 = vsel %vm549_vm6, %v546_v54, %v548_v53  ;;  %v551_v56 = vsel %vm549_vm6, %v548_v53, %v546_v54  ;;  %503 = vmatpush1.msra.mxu1 %v465_v48 }
  0x8a   :  { %v555_v57 = vmul.f32 %v1910_v50, %v550_v55  ;;  %v556_v58 = vmul.f32 %v1915_v51, %v551_v56  ;;  %1649 = vmatmul.mubr.msk.f32.vlgmr.msra.gmra.mxu1 %vm48_vm3, %v1648_v52 }
  0x8b   :  { %716 = vmatprep.mubr.f32.mxu1 %v1717_v2 }
  0x8c   :  { %v638_v62 = vpop.permute.xlu1 %637  ;;  %592 = vmatprep.subr.mxu0 %v556_v58  ;;  %v636_v63 = vpop.permute.xlu0 %635 }
  0x8d   :  { %v640_v3 = vsel %vm639_vm7, %v636_v63, %v638_v62  ;;  %v641_v5 = vsel %vm639_vm7, %v638_v62, %v636_v63  ;;  %593 = vmatpush1.msra.mxu0 %v555_v57 }
  0x8e   :  { %v645_v6 = vmul.f32 %v1933_v59, %v640_v3  ;;  %v646_v11 = vmul.f32 %v1938_v60, %v641_v5  ;;  %1653 = vmatmul.mubr.msk.f32.vlgmr.msra.gmra.mxu0 %vm48_vm3, %v1652_v61 }
  0x8f   :  { %806 = vmatprep.mubr.f32.mxu0 %v1717_v2 }
  0x90   :  { %v728_v15 = vpop.permute.xlu1 %727  ;;  %682 = vmatprep.subr.mxu1 %v646_v11  ;;  %v726_v16 = vpop.permute.xlu0 %725 }
  0x91   :  { %v730_v17 = vsel %vm729_vm8, %v726_v16, %v728_v15  ;;  %v731_v18 = vsel %vm729_vm8, %v728_v15, %v726_v16  ;;  %683 = vmatpush1.msra.mxu1 %v645_v6 }
  0x92   :  { %v735_v20 = vmul.f32 %v1955_v12, %v730_v17  ;;  %v736_v21 = vmul.f32 %v1960_v13, %v731_v18  ;;  %1657 = vmatmul.mubr.msk.f32.vlgmr.msra.gmra.mxu1 %vm48_vm3, %v1656_v14 }
  0x93   :  { %920 = vmatprep.mubr.f32.mxu1 %v1717_v2 }
  0x94   :  { %772 = vmatprep.subr.mxu0 %v736_v21 }
  0x95   :  { %773 = vmatpush1.msra.mxu0 %v735_v20 }
  0x96   :  { %1661 = vmatmul.mubr.msk.f32.vlgmr.msra.gmra.mxu0 %vm48_vm3, %v1660_v23 }
  0x97   :  { %994 = vmatprep.mubr.f32.mxu0 %v1717_v2 }
 0x13e   :  { %v118_v24 = vpop.f32.mrf.mxu0  ;;  %v192_v25 = vpop.f32.mrf.mxu1 }
 0x13f   :  { %v193_v26 = vadd.f32 %v192_v25, %v118_v24 }
 0x140   :  { %v120_v27 = vpop.f32.mrf.mxu0  ;;  %v194_v28 = vpop.f32.mrf.mxu1 }
 0x141   :  { %v195_v29 = vadd.f32 %v194_v28, %v120_v27 }
 0x142   :  { %v280_v30 = vpop.f32.mrf.mxu0 }
 0x143   :  { %v285_v33 = vadd.f32 %v280_v30, %v193_v26 }
 0x144   :  { %v282_v34 = vpop.f32.mrf.mxu0 }
 0x145   :  { %v286_v35 = vadd.f32 %v282_v34, %v195_v29 }
 0x146   :  { %v370_v36 = vpop.f32.mrf.mxu1  ;;  %v448_v37 = vpop.f32.mrf.mxu0 }
 0x147   :  { %v375_v38 = vadd.f32 %v370_v36, %v285_v33 }
 0x148   :  { %v372_v39 = vpop.f32.mrf.mxu1  ;;  %v450_v43 = vpop.f32.mrf.mxu0 }
 0x149   :  { %v376_v42 = vadd.f32 %v372_v39, %v286_v35  ;;  %v453_v45 = vadd.f32 %v448_v37, %v375_v38  ;;  %v1662_v38 = vld [vmem:[%s2092_s1 + $0x8] sm:$0xff] }
 0x14a   :  { %v538_v44 = vpop.f32.mrf.mxu1 }
 0x14b   :  { %v454_v46 = vadd.f32 %v450_v43, %v376_v42  ;;  %v543_v49 = vadd.f32 %v538_v44, %v453_v45 }
 0x14c   :  { %v540_v47 = vpop.f32.mrf.mxu1 }
 0x14d   :  { %v544_v52 = vadd.f32 %v540_v47, %v454_v46 }
 0x14e   :  { %v628_v48 = vpop.f32.mrf.mxu0 }
 0x14f   :  { %v633_v55 = vadd.f32 %v628_v48, %v543_v49 }
 0x150   :  { %v630_v53 = vpop.f32.mrf.mxu0 }
 0x151   :  { %v634_v57 = vadd.f32 %v630_v53, %v544_v52  ;;  %v1665_v52 = vld [vmem:[%s2092_s1 + $0x10] sm:$0xff] }
 0x152   :  { %v718_v54 = vpop.f32.mrf.mxu1 }
 0x153   :  { %v723_v61 = vadd.f32 %v718_v54, %v633_v55 }
 0x154   :  { %v720_v56 = vpop.f32.mrf.mxu1 }
 0x155   :  { %v724_v62 = vadd.f32 %v720_v56, %v634_v57  ;;  %v1667_v57 = vld [vmem:[%s2092_s1 + $0x18] sm:$0xff] }
 0x156   :  { %v808_v58 = vpop.f32.mrf.mxu0 }
 0x157   :  { %v813_v3 = vadd.f32 %v808_v58, %v723_v61  ;;  %v1669_v58 = vld [vmem:[%s2092_s1 + $0x20] sm:$0xff] }
 0x158   :  { %v810_v63 = vpop.f32.mrf.mxu0 }
 0x159   :  { %v814_v5 = vadd.f32 %v810_v63, %v724_v62 }
 0x15b   :  { %v815_v6 = vadd.f32 %v814_v5, %v813_v3 }
 0x15d   :  { %816 = vadd.xlane.f32.xlu0 %v815_v6 }
 0x1e6   :  { %v817_v11 = vpop.xlane.xlu0 %816 }
 0x1e7   :  { %v819_v14 = vmul.f32 0.00390625, %v817_v11 }
 0x1e9   :  { %v820_v15 = vsub.f32 %v813_v3, %v819_v14  ;;  %v821_v16 = vsub.f32 %v814_v5, %v819_v14  ;;  %v1671_v5 = vld [vmem:[%s2092_s1 + $0x28] sm:$0xff] }
 0x1eb   :  { %v822_v17 = vmul.f32 %v820_v15, %v820_v15  ;;  %v823_v18 = vmul.f32 %v821_v16, %v821_v16 }
 0x1ed   :  { %v824_v20 = vadd.f32 %v823_v18, %v822_v17 }
 0x1ef   :  { %825 = vadd.xlane.f32.xlu1 %v824_v20 }
 0x278   :  { %v826_v21 = vpop.xlane.xlu1 %825 }
 0x279   :  { %v827_v23 = vmul.f32 0.00390625, %v826_v21 }
 0x27b   :  { %v828_v24 = vadd.f32 1e-05, %v827_v23  ;;  %v1675_v23 = vld [vmem:[%s2092_s1 + $0x38] sm:$0xff] }
 0x27d   :  { %1689 = vrsqrt.f32 %v828_v24 }
 0x28a   :  { %v1690_v25 = vpop.eup %1689 }
 0x28b   :  { %v830_v26 = vmul.f32 %v1690_v25, %v820_v15  ;;  %v831_v27 = vmul.f32 %v1690_v25, %v821_v16  ;;  %v1673_v16 = vld [vmem:[%s2092_s1 + $0x30] sm:$0xff] }
 0x28d   :  { %v832_v28 = vmax.f32 %v830_v26, 0.0  ;;  %v833_v29 = vmax.f32 %v831_v27, 0.0 }
 0x28f   :  { %845 = vrot.lane.b32.xlu1 %v833_v29, %s1716_s18  ;;  %843 = vrot.lane.b32.xlu0 %v832_v28, %s1716_s18 }
 0x293   :  { %836 = vrot.lane.b32.xlu1 %v833_v29, %s1715_s17  ;;  %834 = vrot.lane.b32.xlu0 %v832_v28, %s1715_s17 }
 0x297   :  { %1003 = vrot.lane.b32.xlu1 %v833_v29, %s1718_s21  ;;  %1001 = vrot.lane.b32.xlu0 %v832_v28, %s1718_s21 }
 0x29b   :  { %1089 = vrot.lane.b32.xlu1 %v833_v29, %s1719_s3  ;;  %1087 = vrot.lane.b32.xlu0 %v832_v28, %s1719_s3 }
 0x29f   :  { %1253 = vrot.lane.b32.xlu1 %v833_v29, %s1720_s22  ;;  %1251 = vrot.lane.b32.xlu0 %v832_v28, %s1720_s22 }
 0x2a3   :  { %1339 = vrot.lane.b32.xlu1 %v833_v29, %s1721_s23  ;;  %1337 = vrot.lane.b32.xlu0 %v832_v28, %s1721_s23 }
 0x2a7   :  { %1425 = vrot.lane.b32.xlu1 %v833_v29, %s1722_s24  ;;  %1423 = vrot.lane.b32.xlu0 %v832_v28, %s1722_s24 }
 0x2ab   :  { %1511 = vrot.lane.b32.xlu1 %v833_v29, %s1723_s25  ;;  %1509 = vrot.lane.b32.xlu0 %v832_v28, %s1723_s25 }
 0x301   :  { %v846_v30 = vpop.permute.xlu1 %845  ;;  %v844_v33 = vpop.permute.xlu0 %843 }
 0x302   :  { %v847_v34 = vsel %vm38_vm1, %v844_v33, %v846_v30  ;;  %v848_v35 = vsel %vm38_vm1, %v846_v30, %v844_v33 }
 0x303   :  { %v849_v36 = vmul.f32 %v1811_v9, %v848_v35  ;;  %v850_v37 = vmul.f32 %v1806_v8, %v847_v34  ;;  %v842_v8 = vld [vmem:[%s2092_s1] sm:$0xff] }
 0x305   :  { %v837_v39 = vpop.permute.xlu1 %836  ;;  %886 = vmatprep.subr.mxu1 %v850_v37  ;;  %v835_v42 = vpop.permute.xlu0 %834 }
 0x306   :  { %v838_v43 = vsel %vm26_vm0, %v835_v42, %v837_v39  ;;  %v839_v44 = vsel %vm26_vm0, %v837_v39, %v835_v42  ;;  %887 = vmatpush1.msra.mxu1 %v849_v36 }
 0x307   :  { %v840_v45 = vmul.f32 %v839_v44, %v1816_v10  ;;  %v841_v9 = vmul.f32 %v838_v43, %v1801_v7  ;;  %1663 = vmatmul.mubr.msk.f32.vlgmr.msra.gmra.mxu1 %vm48_vm3, %v1662_v38 }
 0x308   :  { %1078 = vmatprep.mubr.f32.mxu1 %v1717_v2 }
 0x309   :  { %v1004_v46 = vpop.permute.xlu1 %1003  ;;  %960 = vmatprep.subr.mxu0 %v841_v9  ;;  %v1002_v47 = vpop.permute.xlu0 %1001 }
 0x30a   :  { %v1005_v48 = vsel %vm201_vm2, %v1002_v47, %v1004_v46  ;;  %v1006_v49 = vsel %vm201_vm2, %v1004_v46, %v1002_v47  ;;  %961 = vmatpush1.msra.mxu0 %v840_v45 }
 0x30b   :  { %v1007_v7 = vmul.f32 %v1832_v19, %v1006_v49  ;;  %v1008_v10 = vmul.f32 %v1839_v22, %v1005_v48  ;;  %1664 = vmatmul.mubr.msk.f32.vlgmr.msra.gmra.mxu0 %vm48_vm3, %v842_v8 }
 0x30c   :  { %1164 = vmatprep.mubr.f32.mxu0 %v1717_v2 }
 0x30d   :  { %v1090_v53 = vpop.permute.xlu1 %1089  ;;  %1044 = vmatprep.subr.mxu1 %v1008_v10  ;;  %v1088_v54 = vpop.permute.xlu0 %1087 }
 0x30e   :  { %v1091_v55 = vsel %vm291_vm4, %v1088_v54, %v1090_v53  ;;  %v1092_v56 = vsel %vm291_vm4, %v1090_v53, %v1088_v54  ;;  %1045 = vmatpush1.msra.mxu1 %v1007_v7 }
 0x30f   :  { %v1093_v19 = vmul.f32 %v1859_v31, %v1092_v56  ;;  %v1094_v22 = vmul.f32 %v1864_v32, %v1091_v55  ;;  %1208 = vmatprep.subr.mxu1 %v833_v29  ;;  %1666 = vmatmul.mubr.msk.f32.vlgmr.msra.gmra.mxu1 %vm48_vm3, %v1665_v52 }
 0x310   :  { %1209 = vmatpush1.msra.mxu1 %v832_v28  ;;  %1242 = vmatprep.mubr.f32.mxu1 %v1717_v2 }
 0x311   :  { %v1254_v61 = vpop.permute.xlu1 %1253  ;;  %1130 = vmatprep.subr.mxu0 %v1094_v22  ;;  %v1252_v62 = vpop.permute.xlu0 %1251 }
 0x312   :  { %v1255_v31 = vsel %vm459_vm5, %v1252_v62, %v1254_v61  ;;  %v1256_v32 = vsel %vm459_vm5, %v1254_v61, %v1252_v62  ;;  %1131 = vmatpush1.msra.mxu0 %v1093_v19 }
 0x313   :  { %v1257_v63 = vmul.f32 %v1881_v40, %v1255_v31  ;;  %v1258_v3 = vmul.f32 %v1888_v41, %v1256_v32  ;;  %1668 = vmatmul.mubr.msk.f32.vlgmr.msra.gmra.mxu0 %vm48_vm3, %v1667_v57  ;;  %1670 = vmatmul.mubr.msk.f32.vlgmr.msra.gmra.mxu1 %vm48_vm3, %v1669_v58 }
 0x314   :  { %1328 = vmatprep.mubr.f32.mxu0 %v1717_v2  ;;  %1414 = vmatprep.mubr.f32.mxu1 %v1717_v2 }
 0x315   :  { %v1340_v6 = vpop.permute.xlu1 %1339  ;;  %1294 = vmatprep.subr.mxu0 %v1258_v3  ;;  %v1338_v11 = vpop.permute.xlu0 %1337 }
 0x316   :  { %v1341_v40 = vsel %vm549_vm6, %v1338_v11, %v1340_v6  ;;  %v1342_v41 = vsel %vm549_vm6, %v1340_v6, %v1338_v11  ;;  %1295 = vmatpush1.msra.mxu0 %v1257_v63 }
 0x317   :  { %v1343_v14 = vmul.f32 %v1910_v50, %v1341_v40  ;;  %v1344_v15 = vmul.f32 %v1915_v51, %v1342_v41  ;;  %1672 = vmatmul.mubr.msk.f32.vlgmr.msra.gmra.mxu0 %vm48_vm3, %v1671_v5 }
 0x318   :  { %1500 = vmatprep.mubr.f32.mxu0 %v1717_v2 }
 0x319   :  { %v1426_v17 = vpop.permute.xlu1 %1425  ;;  %1380 = vmatprep.subr.mxu1 %v1344_v15  ;;  %v1424_v18 = vpop.permute.xlu0 %1423 }
 0x31a   :  { %v1427_v20 = vsel %vm639_vm7, %v1424_v18, %v1426_v17  ;;  %v1428_v21 = vsel %vm639_vm7, %v1426_v17, %v1424_v18  ;;  %1381 = vmatpush1.msra.mxu1 %v1343_v14 }
 0x31b   :  { %v1429_v50 = vmul.f32 %v1933_v59, %v1427_v20  ;;  %v1430_v51 = vmul.f32 %v1938_v60, %v1428_v21  ;;  %1674 = vmatmul.mubr.msk.f32.vlgmr.msra.gmra.mxu1 %vm48_vm3, %v1673_v16 }
 0x31c   :  { %1586 = vmatprep.mubr.f32.mxu1 %v1717_v2  ;;  %v1677_v2 = vld [vmem:[%s2092_s1 + $0x40] sm:$0xff]  ;;  %s1724_s1 = smov [#allocation2]  }
 0x31d   :  { %v1512_v24 = vpop.permute.xlu1 %1511  ;;  %1466 = vmatprep.subr.mxu0 %v1430_v51  ;;  %v1510_v25 = vpop.permute.xlu0 %1509  ;;  %s1623_s27 = sshll.u32 %s1724_s1, 4  ;;  %s1624_s27 = int_to_ptr.vmem [resolvable:$true] %s1623_s27 }
 0x31e   :  { %v1513_v26 = vsel %vm729_vm8, %v1510_v25, %v1512_v24  ;;  %v1514_v27 = vsel %vm729_vm8, %v1512_v24, %v1510_v25  ;;  %1467 = vmatpush1.msra.mxu0 %v1429_v50  ;;  %s1693_s28 = scalar_lea.vmem %s1624_s27, 256  ;;  %p1698_p1 = scmp.lt.s32.totalorder %s1624_s27, %s1624_s27 }
 0x31f   :  { %v1515_v59 = vmul.f32 %v1955_v12, %v1513_v26  ;;  %v1516_v60 = vmul.f32 %v1960_v13, %v1514_v27  ;;  %1676 = vmatmul.mubr.msk.f32.vlgmr.msra.gmra.mxu0 %vm48_vm3, %v1675_v23  ;;  %p1694_p0 = scmp.ne.s32.totalorder %s1624_s27, %s1693_s28  ;;  %p1699_p2 = scmp.lt.s32.totalorder %s1693_s28, %s1693_s28 }
 0x321   :  { %1552 = vmatprep.subr.mxu1 %v1516_v60  ;;  %p1700_p3 = por %p1699_p2, %p1698_p1 }
 0x322   :  { %1553 = vmatpush1.msra.mxu1 %v1515_v59 }
 0x323   :  { %1678 = vmatmul.mubr.msk.f32.vlgmr.msra.gmra.mxu1 %vm48_vm3, %v1677_v2  ;;  %p1701_p4 = pnand %p1700_p3, %p1694_p0 }
 0x3c7   :  { %v922_v28 = vpop.f32.mrf.mxu1 }
 0x3c9   :  { %v924_v29 = vpop.f32.mrf.mxu1 }
 0x3cb   :  { %v996_v30 = vpop.f32.mrf.mxu0 }
 0x3cc   :  { %v997_v4 = vadd.f32 %v996_v30, %v922_v28 }
 0x3cd   :  { %v998_v33 = vpop.f32.mrf.mxu0 }
 0x3ce   :  { %v999_v34 = vadd.f32 %v998_v33, %v924_v29 }
 0x3cf   :  { %v1080_v35 = vpop.f32.mrf.mxu1 }
 0x3d0   :  { %v1085_v12 = vadd.f32 %v1080_v35, %v997_v4 }
 0x3d1   :  { %v1082_v36 = vpop.f32.mrf.mxu1 }
 0x3d2   :  { %v1086_v13 = vadd.f32 %v1082_v36, %v999_v34 }
 0x3d3   :  { %v1166_v37 = vpop.f32.mrf.mxu0  ;;  %v1244_v38 = vpop.f32.mrf.mxu1 }
 0x3d4   :  { %v1171_v39 = vadd.f32 %v1166_v37, %v1085_v12 }
 0x3d5   :  { %v1168_v42 = vpop.f32.mrf.mxu0  ;;  %v1246_v44 = vpop.f32.mrf.mxu1 }
 0x3d6   :  { %v1172_v43 = vadd.f32 %v1168_v42, %v1086_v13  ;;  %v1249_v9 = vadd.f32 %v1244_v38, %v1171_v39 }
 0x3d7   :  { %v1330_v45 = vpop.f32.mrf.mxu0 }
 0x3d8   :  { %v1250_v8 = vadd.f32 %v1246_v44, %v1172_v43  ;;  %v1335_v48 = vadd.f32 %v1330_v45, %v1249_v9 }
 0x3d9   :  { %v1332_v46 = vpop.f32.mrf.mxu0 }
 0x3da   :  { %v1336_v49 = vadd.f32 %v1332_v46, %v1250_v8 }
 0x3db   :  { %v1416_v47 = vpop.f32.mrf.mxu1 }
 0x3dc   :  { %v1421_v52 = vadd.f32 %v1416_v47, %v1335_v48 }
 0x3dd   :  { %v1418_v7 = vpop.f32.mrf.mxu1 }
 0x3de   :  { %v1422_v54 = vadd.f32 %v1418_v7, %v1336_v49 }
 0x3df   :  { %v1502_v10 = vpop.f32.mrf.mxu0 }
 0x3e0   :  { %v1507_v56 = vadd.f32 %v1502_v10, %v1421_v52 }
 0x3e1   :  { %v1504_v53 = vpop.f32.mrf.mxu0 }
 0x3e2   :  { %v1508_v19 = vadd.f32 %v1504_v53, %v1422_v54 }
 0x3e3   :  { %v1588_v55 = vpop.f32.mrf.mxu1 }
 0x3e4   :  { %v1593_v57 = vadd.f32 %v1588_v55, %v1507_v56 }
 0x3e5   :  { %v1590_v22 = vpop.f32.mrf.mxu1 }
 0x3e6   :  { %v1594_v58 = vadd.f32 %v1590_v22, %v1508_v19 }
 0x3e8   :  { %v1595_v61 = vadd.f32 %v1594_v58, %v1593_v57 }
 0x3ea   :  { %1596 = vadd.xlane.f32.xlu0 %v1595_v61 }
 0x473   :  { %v1597_v62 = vpop.xlane.xlu0 %1596 }
 0x474   :  { %v1598_v31 = vmul.f32 0.00390625, %v1597_v62 }
 0x476   :  { %v1599_v32 = vsub.f32 %v1593_v57, %v1598_v31  ;;  %v1600_v63 = vsub.f32 %v1594_v58, %v1598_v31 }
 0x478   :  { %v1601_v3 = vmul.f32 %v1599_v32, %v1599_v32  ;;  %v1602_v5 = vmul.f32 %v1600_v63, %v1600_v63 }
 0x47a   :  { %v1603_v6 = vadd.f32 %v1602_v5, %v1601_v3 }
 0x47c   :  { %1604 = vadd.xlane.f32.xlu1 %v1603_v6 }
 0x505   :  { %v1605_v11 = vpop.xlane.xlu1 %1604 }
 0x506   :  { %v1606_v40 = vmul.f32 0.00390625, %v1605_v11 }
 0x508   :  { %v1607_v41 = vadd.f32 1e-05, %v1606_v40 }
 0x50a   :  { %1691 = vrsqrt.f32 %v1607_v41 }
 0x517   :  { %v1692_v14 = vpop.eup %1691 }
 0x518   :  { %v1609_v15 = vmul.f32 %v1692_v14, %v1599_v32  ;;  %v1610_v16 = vmul.f32 %v1692_v14, %v1600_v63 }
 0x51a   :  { %v1611_v17 = vadd.f32 %v1609_v15, %v1753_v0  ;;  %v1612_v18 = vadd.f32 %v1610_v16, %v1762_v1 }
 0x51c   :  { %v1613_v20 = vmax.f32 %v1611_v17, 0.0  ;;  %v1614_v21 = vmax.f32 %v1612_v18, 0.0 }
 0x51e   :  { %1615 = vst [vmem:[#allocation2] sm:$0xff] %v1613_v20  ;;  %1616 = vst [vmem:[#allocation2 + $0x8] sm:$0xff] %v1614_v21 }
 0x51f   :  { %1704 = shalt.err (!%p1701_p4)
}
 0x520   :  { %1626 = dma.vmem_to_hbm [thread:$0]  %s1624_s27, 256, %s2095_s4, [#allocation3]  }
 0x521   :  { %1713 = dma.done.wait [#allocation3], 256  }
 0x522   :  { %1714 = vsyncadd [#allocation3], 4294967040 }
 0x523   :  { %1630 = vsyncpa [#allocation3], 1 }

</bundles_post_ra>
